<compile_context>
chip_gen: v7x
topology: tpu7x:2x2x1
jax: 0.10.0
libtpu: 0.0.40
codegen_flags: <defaults>
</compile_context>

<pallas_src>
import functools

import jax
import jax.numpy as jnp
from jax.experimental import pallas as pl
from jax.experimental.pallas import tpu as pltpu


def _round_up(x, m):
    return (x + m - 1) // m * m


def _cdiv(a, b):
    return (a + b - 1) // b


def _linear_kernel(x_ref, w_ref, b_ref, o_ref):
    # bf16 x bf16 on the MXU, f32 accumulation; bias added in f32; cast at store.
    acc = jnp.dot(x_ref[...], w_ref[...], preferred_element_type=jnp.float32)
    o_ref[...] = (acc + b_ref[...]).astype(o_ref.dtype)


def init_numerical_embedder_params(w, b):
    """Cast + N-pad the parameters ONCE, outside the per-call hot path.

    w: [input_dim, output_dim]  (transpose of the PyTorch nn.Linear weight)
    b: [output_dim] or [1, output_dim]
    Returns (w_pad bf16 [k, n_pad], b_pad f32 [1, n_pad], n).
    """
    k, n = w.shape
    n_pad = _round_up(n, 128)
    w_pad = jnp.pad(w.astype(jnp.bfloat16), ((0, 0), (0, n_pad - n)))
    b_pad = jnp.pad(b.reshape(1, -1).astype(jnp.float32), ((0, 0), (0, n_pad - n)))
    return w_pad, b_pad, n


@functools.partial(
    jax.jit,
    static_argnames=("block_m", "out_dtype", "vmem_budget_bytes"),
)
def numerical_embedder_forward(x, w_pad, b_pad, *, block_m=512,
                               out_dtype=jnp.bfloat16,
                               vmem_budget_bytes=32 * 1024 * 1024):
    """y_pad = x @ w_pad + b_pad, returned in the lane-dense [m, n_pad] layout.

    Pass x in bf16 to avoid an extra full HBM cast pass.  Slice [:, :n] only
    where the exact output width is actually required downstream.
    """
    m, k = x.shape
    k_w, n_pad = w_pad.shape
    assert k_w == k, "weight must be [input_dim, n_pad]"
    assert n_pad % 128 == 0, "pad parameters with init_numerical_embedder_params()"
    out_dtype = jnp.dtype(out_dtype)
    out_bytes = out_dtype.itemsize

    if x.dtype != jnp.bfloat16:
        # Extra HBM pass; callers should keep activations in bf16.
        x = x.astype(jnp.bfloat16)

    # ---- block-size selection (all static / trace-time) -------------------
    k_lanes = _round_up(k, 128)                        # x tile lane padding in VMEM
    fixed = 2 * (_round_up(k, 16) * n_pad * 2)         # bf16 weight (double-buffered)
    fixed += 2 * (8 * n_pad * 4)                       # f32 bias (sublane-padded)
    per_row = 2 * (k_lanes * 2 + n_pad * out_bytes)    # bf16 x tile + out tile, x2 buffers
    bm_cap = max((vmem_budget_bytes - fixed) // per_row, 16)
    bm = min(block_m, bm_cap, _round_up(m, 16))
    bm = max((bm // 16) * 16, 16)
    # Balance so the last (masked) block is nearly full (pad waste <= 15 rows).
    nblk = max(_cdiv(m, bm), 1)
    bm = max(_round_up(_cdiv(m, nblk), 16), 16)
    # v7x megacore occupancy: prefer >= 2 blocks on the parallel M axis.
    if _cdiv(m, bm) < 2 and bm >= 32:
        bm = max(_round_up(_cdiv(bm, 2), 16), 16)

    grid = (_cdiv(m, bm),)   # uneven last block OK: OOB reads unused, writes masked

    # Generation-aware scoped-VMEM cap (leave headroom on the 64 MiB v7x part).
    try:
        vmem_cap = getattr(pltpu.get_tpu_info(), "vmem_capacity_bytes",
                           128 * 1024 * 1024)
    except Exception:  # pragma: no cover - defensive fallback
        vmem_cap = 128 * 1024 * 1024
    vmem_limit = int(min(vmem_budget_bytes + (8 << 20), (vmem_cap * 3) // 4))

    cost = pl.CostEstimate(
        flops=2 * m * k * n_pad,
        transcendentals=0,
        bytes_accessed=(m * k * 2 + k * n_pad * 2 + n_pad * 4
                        + m * n_pad * out_bytes),
    )

    y_pad = pl.pallas_call(
        _linear_kernel,
        out_shape=jax.ShapeDtypeStruct((m, n_pad), out_dtype),
        grid_spec=pltpu.PrefetchScalarGridSpec(
            num_scalar_prefetch=0,
            grid=grid,
            in_specs=[
                pl.BlockSpec((bm, k), lambda i: (i, 0)),        # x tile
                pl.BlockSpec((k, n_pad), lambda i: (0, 0)),     # weight, VMEM-resident
                pl.BlockSpec((1, n_pad), lambda i: (0, 0)),     # bias, VMEM-resident
            ],
            out_specs=pl.BlockSpec((bm, n_pad), lambda i: (i, 0)),
        ),
        compiler_params=pltpu.CompilerParams(
            dimension_semantics=("parallel",),
            vmem_limit_bytes=vmem_limit,
        ),
        cost_estimate=cost,
    )(x, w_pad, b_pad)

    return y_pad


def numerical_embedder(x, w_pad, b_pad, n, **kwargs):
    """Convenience wrapper returning the exact [m, n] output (adds a slice pass)."""
    return numerical_embedder_forward(x, w_pad, b_pad, **kwargs)[:, :n]


if __name__ == "__main__":
    # Small shapes consistent with the module's forward: linear(input_dim, output_dim).
    batch, input_dim, output_dim = 16, 32, 64

    key = jax.random.PRNGKey(0)
    kx, kw, kb = jax.random.split(key, 3)

    # Deterministic init matching nn.Linear's U(-1/sqrt(fan_in), 1/sqrt(fan_in)).
    bound = 1.0 / (input_dim ** 0.5)
    # PyTorch weight shape is (output_dim, input_dim); we store its transpose.
    w = jax.random.uniform(kw, (input_dim, output_dim), jnp.float32,
                           minval=-bound, maxval=bound)
    b = jax.random.uniform(kb, (1, output_dim), jnp.float32,
                           minval=-bound, maxval=bound)
    x = jax.random.normal(kx, (batch, input_dim), jnp.float32)

    # Params are padded/cast once; activations kept in bf16 (intentional precision
    # choice for an embedding layer).
    w_pad, b_pad, n = init_numerical_embedder_params(w, b)
    x_bf16 = x.astype(jnp.bfloat16)

    y_pad = numerical_embedder_forward(x_bf16, w_pad, b_pad)
    jax.block_until_ready(y_pad)
    y = y_pad[:batch, :n].astype(jnp.float32)

    # Reference: same bf16-rounded operands, f32 math; output compared at bf16
    # precision (the kernel stores bf16 by design).
    x_ref = x.astype(jnp.bfloat16).astype(jnp.float32)
    w_ref = w.astype(jnp.bfloat16).astype(jnp.float32)
    y_ref = x_ref @ w_ref + b

    assert y.shape == (batch, output_dim)
    assert jnp.allclose(y, y_ref, atol=2e-2, rtol=2e-2), "mismatch vs reference"
    print("KERNEL_OK")
</pallas_src>

<mosaic_0001>
module attributes {stable_mosaic.version = 11 : i64} {
  func.func @_linear_kernel(%arg0: i32, %arg1: memref<16x32xbf16, #tpu.memory_space<vmem>>, %arg2: memref<32x128xbf16, #tpu.memory_space<vmem>>, %arg3: memref<1x128xf32, #tpu.memory_space<vmem>>, %arg4: memref<16x128xbf16, #tpu.memory_space<vmem>>) attributes {dimension_semantics = [#tpu.dimension_semantics<parallel>], iteration_bounds = array<i64: 1>, scalar_prefetch = 0 : i64, scratch_operands = 0 : i64, tpu.core_type = #tpu.core_type<tc>, window_params = [{transform_indices = @transform_0, window_bounds = array<i64: 16, 32>}, {pipeline_mode = #tpu.pipeline_mode<synchronous>, transform_indices = @transform_1, window_bounds = array<i64: 32, 128>}, {pipeline_mode = #tpu.pipeline_mode<synchronous>, transform_indices = @transform_2, window_bounds = array<i64: 1, 128>}, {transform_indices = @transform_3, window_bounds = array<i64: 16, 128>}]} {
    %c0 = arith.constant 0 : index
    %c0_0 = arith.constant 0 : index
    %0 = vector.load %arg1[%c0, %c0_0] : memref<16x32xbf16, #tpu.memory_space<vmem>>, vector<16x32xbf16>
    %c0_1 = arith.constant 0 : index
    %c0_2 = arith.constant 0 : index
    %1 = vector.load %arg2[%c0_1, %c0_2] : memref<32x128xbf16, #tpu.memory_space<vmem>>, vector<32x128xbf16>
    %cst = arith.constant dense<0.000000e+00> : vector<16x128xf32>
    %2 = tpu.matmul %0, %1, %cst {dimension_numbers = #tpu.dot_dimension_numbers<[1], [0], [0], [1], [0, 0, 1, 1], [], []>} : vector<16x32xbf16>, vector<32x128xbf16>, vector<16x128xf32> -> vector<16x128xf32>
    %c0_3 = arith.constant 0 : index
    %c0_4 = arith.constant 0 : index
    %3 = vector.load %arg3[%c0_3, %c0_4] : memref<1x128xf32, #tpu.memory_space<vmem>>, vector<1x128xf32>
    %4 = vector.broadcast %3 : vector<1x128xf32> to vector<16x128xf32>
    %5 = arith.addf %2, %4 : vector<16x128xf32>
    %6 = arith.truncf %5 : vector<16x128xf32> to vector<16x128xbf16>
    %c0_5 = arith.constant 0 : index
    %c0_6 = arith.constant 0 : index
    %7 = vector.load %arg4[%c0_5, %c0_6] : memref<16x128xbf16, #tpu.memory_space<vmem>>, vector<16x128xbf16>
    tpu.vector_store %arg4[%c0_5, %c0_6], %6 {strides = array<i32>} : memref<16x128xbf16, #tpu.memory_space<vmem>>, vector<16x128xbf16>,
    return
  }
  func.func @transform_0(%arg0: i32) -> (i32, i32) {
    %c0_i32 = arith.constant 0 : i32
    %c0_i32_0 = arith.constant 0 : i32
    return %arg0, %c0_i32 : i32, i32
  }
  func.func @transform_1(%arg0: i32) -> (i32, i32) {
    %c0_i32 = arith.constant 0 : i32
    %c0_i32_0 = arith.constant 0 : i32
    %c0_i32_1 = arith.constant 0 : i32
    return %c0_i32, %c0_i32_0 : i32, i32
  }
  func.func @transform_2(%arg0: i32) -> (i32, i32) {
    %c0_i32 = arith.constant 0 : i32
    %c0_i32_0 = arith.constant 0 : i32
    %c0_i32_1 = arith.constant 0 : i32
    return %c0_i32, %c0_i32_0 : i32, i32
  }
  func.func @transform_3(%arg0: i32) -> (i32, i32) {
    %c0_i32 = arith.constant 0 : i32
    %c0_i32_0 = arith.constant 0 : i32
    return %arg0, %c0_i32 : i32, i32
  }
}

</mosaic_0001>

<bundles_post_ra>
// kernel: numerical_embedder_forward.1
= control target key start
LH: loop header
LB: loop body
LE: loop exit
PB: predicated region body
PF: predicated region fallthrough
CT: control target
= control target key end

     0   :  { %8 = vsyncpa [#allocation3], 0  ;;  %s329_s0 = inlined_call_operand.hbm [shape: bf16[16,32], index: 0, kind: input, shape index: {}]   ;;  %s330_s1 = inlined_call_operand.hbm [shape: bf16[32,128], index: 1, kind: input, shape index: {}]   ;;  %s331_s2 = inlined_call_operand.vmem [shape: f32[1,128], index: 2, kind: input, shape index: {}]   ;;  %s332_s3 = inlined_call_operand.hbm [shape: bf16[16,128], index: 3, kind: output, shape index: {}]  }
   0x1   :  { %9 = vsyncpa [#allocation6], 0 }
   0x2   :  { %10 = vsyncpa [#allocation4], 0  ;;  %s254_s12 = smov [#allocation2]   ;;  %s182_s16 = scalar_lea.hbm %s329_s0, 128 }
   0x3   :  { %s16_s13 = sshll.u32 %s254_s12, 4  ;;  %p183_p0 = scmp.ne.s32.totalorder %s329_s0, %s182_s16  ;;  %s17_s13 = int_to_ptr.vmem [resolvable:$true] %s16_s13 }
   0x4   :  { %p186_p1 = scmp.lt.u32.totalorder %s182_s16, %s329_s0 }
   0x6   :  { %p188_p2 = pnand %p186_p1, %p183_p0 }
   0x8   :  { %191 = shalt.err (!%p188_p2)
}
   0x9   :  { %s192_s21 = scalar_lea.vmem %s17_s13, 128  ;;  %p197_p4 = scmp.lt.s32.totalorder %s17_s13, %s17_s13 }
   0xa   :  { %p193_p3 = scmp.ne.s32.totalorder %s17_s13, %s192_s21  ;;  %p198_p5 = scmp.lt.s32.totalorder %s192_s21, %s192_s21 }
   0xc   :  { %p199_p6 = por %p198_p5, %p197_p4 }
   0xe   :  { %p200_p7 = pnand %p199_p6, %p193_p3 }
  0x10   :  { %203 = shalt.err (!%p200_p7)
}
  0x11   :  { %s255_s22 = smov 64   ;;  %s256_s23 = smov 4  }
  0x12   :  { %22 = dma.hbm_to_vmem [thread:$0]  %s329_s0, 128, %s17_s13, [#allocation3], %s255_s22, %s255_s22, %s256_s23  }
  0x13   :  { %s257_s26 = smov [#allocation5]   ;;  %s204_s30 = scalar_lea.hbm %s330_s1, 256 }
  0x14   :  { %s28_s27 = sshll.u32 %s257_s26, 4  ;;  %p205_p8 = scmp.ne.s32.totalorder %s330_s1, %s204_s30  ;;  %s29_s27 = int_to_ptr.vmem [resolvable:$true] %s28_s27 }
  0x15   :  { %p208_p9 = scmp.lt.u32.totalorder %s204_s30, %s330_s1 }
  0x17   :  { %p210_p10 = pnand %p208_p9, %p205_p8 }
  0x19   :  { %213 = shalt.err (!%p210_p10)
}
  0x1a   :  { %s214_s8 = scalar_lea.vmem %s29_s27, 256  ;;  %p219_p12 = scmp.lt.s32.totalorder %s29_s27, %s29_s27 }
  0x1b   :  { %p215_p11 = scmp.ne.s32.totalorder %s29_s27, %s214_s8  ;;  %p220_p13 = scmp.lt.s32.totalorder %s214_s8, %s214_s8 }
  0x1d   :  { %p221_p0 = por %p220_p13, %p219_p12 }
  0x1f   :  { %p222_p1 = pnand %p221_p0, %p215_p11 }
  0x21   :  { %225 = shalt.err (!%p222_p1)
}
  0x22   :  { %34 = dma.hbm_to_vmem [thread:$0]  %s330_s1, 256, %s29_s27, [#allocation6], %s255_s22, %s255_s22, %s256_s23  }
  0x23   :  { %248 = dma.done.wait [#allocation3], 128  }
  0x24   :  { %249 = vsyncadd [#allocation3], 4294967168 }
  0x25   :  { %250 = dma.done.wait [#allocation6], 256  }
  0x26   :  { %251 = vsyncadd [#allocation6], 4294967040  ;;  %v258_v0 = vmov 0.0   ;;  %vm259_vm0 = vmmov 0   ;;  %v179_v1 = vld [vmem:[#allocation5] sm:$0xff]   ;;  %v180_v2 = vld [vmem:[#allocation5 + $0x8] sm:$0xff]  }
  0x27   :  { %164 = vmatprep.subr.bf16.mxu0 %v258_v0  ;;  %168 = vmatprep.mubr.msk.bf16.mxu0 %vm259_vm0, %v258_v0  ;;  %v181_v3 = vld [vmem:[#allocation2] sm:$0xff]   ;;  %vm74_vm1 = vcmask 261120   ;;  %s260_s1 = smov [#allocation7]  }
  0x28   :  { %165 = vmatpush3.bf16.msra.mxu0 %v179_v1  ;;  %v147_v4 = vld [vmem:[%s331_s2] ss:$0 sm:$0xff]  ;;  %s134_s12 = sshll.u32 %s260_s1, 4  ;;  %s135_s12 = int_to_ptr.vmem [resolvable:$true] %s134_s12 }
  0x29   :  { %166 = vmatprep.subr.bf16.mxu0 %v258_v0  ;;  %s226_s13 = scalar_lea.vmem %s135_s12, 128  ;;  %p231_p3 = scmp.lt.s32.totalorder %s135_s12, %s135_s12 }
  0x2a   :  { %p227_p2 = scmp.ne.s32.totalorder %s135_s12, %s226_s13  ;;  %p232_p4 = scmp.lt.s32.totalorder %s226_s13, %s226_s13 }
  0x2c   :  { %167 = vmatpush3.bf16.msra.mxu0 %v180_v2  ;;  %p233_p5 = por %p232_p4, %p231_p3 }
  0x2e   :  { %p234_p6 = pnand %p233_p5, %p227_p2 }
  0x2f   :  { %169 = vmatmul.mubr.msk.bf16.vlgmr.msra.gmra.mrb[0].mxu0 %vm74_vm1, %v181_v3 }
 0x102   :  { %v112_v5 = vpop.f32.mrb[0].mxu0 }
 0x103   :  { %v170_v6 = vpop.f32.mrb[1].mxu0  ;;  %v113_v8 = vadd.f32 %v147_v4, %v112_v5 }
 0x104   :  { %v115_v7 = vpop.f32.mrb[2].mxu0 }
 0x105   :  { %v116_v9 = vadd.f32 %v147_v4, %v115_v7  ;;  %v171_v10 = vpop.f32.mrb[3].mxu0 }
 0x107   :  { %v159_v11 = vpack.c.bf16 %v116_v9, %v113_v8 }
 0x109   :  { %160 = vst [vmem:[#allocation7] sm:$0xff] %v159_v11  }
 0x10a   :  { %237 = shalt.err (!%p234_p6)
}
 0x10b   :  { %s238_s15 = scalar_lea.hbm %s332_s3, 128 }
 0x10c   :  { %p239_p7 = scmp.ne.s32.totalorder %s332_s3, %s238_s15  ;;  %p242_p8 = scmp.lt.u32.totalorder %s238_s15, %s332_s3 }
 0x10e   :  { %p244_p9 = pnand %p242_p8, %p239_p7 }
 0x110   :  { %247 = shalt.err (!%p244_p9)
}
 0x111   :  { %140 = dma.vmem_to_hbm [thread:$0]  %s135_s12, 128, %s332_s3, [#allocation4], %s255_s22, %s255_s22, %s256_s23  }
 0x112   :  { %252 = dma.done.wait [#allocation4], 128  }
 0x113   :  { %253 = vsyncadd [#allocation4], 4294967168 }
 0x114   :  { %144 = vsyncpa [#allocation3], 1 }
 0x115   :  { %145 = vsyncpa [#allocation6], 1 }
 0x116   :  { %146 = vsyncpa [#allocation4], 1 }

</bundles_post_ra>
